<compile_context>
chip_gen: v6e
topology: v6e:2x2x1
jax: 0.10.0
libtpu: 0.0.40
codegen_flags: <defaults>
</compile_context>

<pallas_src>
import functools

import jax
import jax.numpy as jnp
from jax.experimental import pallas as pl
from jax.experimental.pallas import tpu as pltpu

EPS = 1e-5
NEG_INF = -1e30


def _round_up(x, m):
    return ((x + m - 1) // m) * m


# ---------------------------------------------------------------------------
# Phase 1: style-side 1x1 convs.  Emits G^T (Cp, tk) and H (tk, Cp), bf16.
# Normalization of the style tile is a per-batch scale/shift (mean, 1/std).
# ---------------------------------------------------------------------------
def _style_conv_kernel(y_ref, mean_ref, inv_ref, wg_ref, bg_ref, wh_ref,
                       bh_ref, gt_ref, h_ref):
    y = y_ref[0]                                                 # (TK, Cp) f32
    y_norm = ((y - mean_ref[0]) * inv_ref[0]).astype(jnp.bfloat16)
    g = jnp.dot(y_norm, wg_ref[...],
                preferred_element_type=jnp.float32) + bg_ref[...]
    h = jnp.dot(y.astype(jnp.bfloat16), wh_ref[...],
                preferred_element_type=jnp.float32) + bh_ref[...]
    # Transpose once per (batch, key-tile) here so the inner attention loop
    # never transposes G (amortized nq-fold).
    gt_ref[0] = jnp.transpose(g).astype(jnp.bfloat16)            # (Cp, TK)
    h_ref[0] = h.astype(jnp.bfloat16)


# ---------------------------------------------------------------------------
# Phase 2: flash attention (online softmax) + out_conv + residual.
# ---------------------------------------------------------------------------
def _sanet_attn_kernel(x_ref, mean_ref, inv_ref, gt_ref, h_ref, wf_ref,
                       bf_ref, wo_ref, bo_ref, out_ref,
                       f_sc, m_sc, l_sc, acc_sc, *, valid_last, has_pad):
    k = pl.program_id(2)
    last = pl.num_programs(2) - 1

    @pl.when(k == 0)
    def _init():
        # F = f(mvn(content)) for this query tile; computed once per
        # (batch, query-tile) and reused for all key tiles.
        x_norm = ((x_ref[0] - mean_ref[0]) * inv_ref[0]).astype(jnp.bfloat16)
        f = jnp.dot(x_norm, wf_ref[...],
                    preferred_element_type=jnp.float32) + bf_ref[...]
        f_sc[...] = f.astype(jnp.bfloat16)
        m_sc[...] = jnp.full_like(m_sc, NEG_INF)
        l_sc[...] = jnp.zeros_like(l_sc)
        acc_sc[...] = jnp.zeros_like(acc_sc)

    gt = gt_ref[0]                                               # (Cp, TK) bf16
    h = h_ref[0]                                                 # (TK, Cp) bf16

    # S[q, k] = <F_q, G_k>; plain (TQ,Cp)x(Cp,TK) MXU matmul (G pre-transposed).
    s = jnp.dot(f_sc[...], gt, preferred_element_type=jnp.float32)

    def _update(s_val):
        m_prev = m_sc[...]
        m_new = jnp.maximum(m_prev, jnp.max(s_val, axis=-1, keepdims=True))
        alpha = jnp.exp(m_prev - m_new)
        p = jnp.exp(s_val - m_new)          # padded cols underflow to 0 exactly
        l_sc[...] = alpha * l_sc[...] + jnp.sum(p, axis=-1, keepdims=True)
        acc_sc[...] = alpha * acc_sc[...] + jnp.dot(
            p.astype(jnp.bfloat16), h, preferred_element_type=jnp.float32)
        m_sc[...] = m_new

    if has_pad:
        # Only the last key tile contains padded key positions: mask there,
        # run the cheap unmasked path everywhere else.
        @pl.when(k != last)
        def _no_mask():
            _update(s)

        @pl.when(k == last)
        def _masked():
            col = jax.lax.broadcasted_iota(jnp.int32, s.shape, 1)
            _update(jnp.where(col < valid_last, s, NEG_INF))
    else:
        _update(s)

    @pl.when(k == last)
    def _finalize():
        inv_l = pl.reciprocal(l_sc[...], approx=True)
        o = acc_sc[...] * inv_l                                  # (TQ, Cp) f32
        o = jnp.dot(o.astype(jnp.bfloat16), wo_ref[...],
                    preferred_element_type=jnp.float32) + bo_ref[...]
        out_ref[0] = (o + x_ref[0]).astype(out_ref.dtype)


# ---------------------------------------------------------------------------
# Wrapper: layout conversion, stats, padding, two pallas_calls.
# ---------------------------------------------------------------------------
def sanet_forward(content_nchw, style_nchw, params, *, tq=512, tk=256):
    """content/style: (B, C, H, W) float32.  Returns (B, C, Hc, Wc)."""
    B, C, Hc, Wc = content_nchw.shape
    _, _, Hs, Ws = style_nchw.shape
    HWc, HWs = Hc * Wc, Hs * Ws

    # NCHW -> (B, HW, C); same row-major (h, w) flattening as torch .view().
    x = jnp.transpose(content_nchw, (0, 2, 3, 1)).reshape(B, HWc, C)
    y = jnp.transpose(style_nchw, (0, 2, 3, 1)).reshape(B, HWs, C)
    x = x.astype(jnp.float32)
    y = y.astype(jnp.float32)

    # Per-(batch, channel) spatial stats (torch.var is unbiased, ddof=1).
    def _stats(t, n):
        mean = jnp.mean(t, axis=1)                               # (B, C)
        var = jnp.sum(jnp.square(t - mean[:, None, :]), axis=1) / max(n - 1, 1)
        return mean, jax.lax.rsqrt(var + EPS)

    mean_x, inv_x = _stats(x, HWc)
    mean_y, inv_y = _stats(y, HWs)

    # Lane/sublane-friendly padding:
    #   channels -> multiple of 128 (lane-dense);
    #   query tile -> multiple of 16 (bf16 sublanes);
    #   key tile  -> multiple of 128 (it is the lane dim of the G^T tile).
    Cp = _round_up(C, 128)
    tq = _round_up(max(16, min(tq, _round_up(HWc, 16))), 16)
    tk = _round_up(max(128, min(tk, _round_up(HWs, 128))), 128)
    HWc_p = _round_up(HWc, tq)
    HWs_p = _round_up(HWs, tk)
    nq, nk = HWc_p // tq, HWs_p // tk
    has_pad = HWs_p != HWs
    valid_last = HWs - (nk - 1) * tk        # valid keys in the last key tile

    def _pad3(a, r, c):
        return jnp.pad(a, ((0, 0), (0, r - a.shape[1]), (0, c - a.shape[2])))

    def _pad_vec(v):                                             # (B, C) -> (B, 1, Cp)
        return jnp.pad(v, ((0, 0), (0, Cp - C)))[:, None, :].astype(jnp.float32)

    def _pad_w(w):                                               # (out, in) -> (Cp, Cp) bf16
        return jnp.pad(w.T, ((0, Cp - C), (0, Cp - C))).astype(jnp.bfloat16)

    def _pad_b(b):                                               # (C,) -> (1, Cp) f32
        return jnp.pad(b, (0, Cp - C)).reshape(1, Cp).astype(jnp.float32)

    x_p = _pad3(x, HWc_p, Cp)
    y_p = _pad3(y, HWs_p, Cp)
    mean_x_p, inv_x_p = _pad_vec(mean_x), _pad_vec(inv_x)
    mean_y_p, inv_y_p = _pad_vec(mean_y), _pad_vec(inv_y)

    wf_p, wg_p = _pad_w(params["wf"]), _pad_w(params["wg"])      # bf16, shared
    wh_p, wo_p = _pad_w(params["wh"]), _pad_w(params["wo"])
    bf_p, bg_p = _pad_b(params["bf"]), _pad_b(params["bg"])
    bh_p, bo_p = _pad_b(params["bh"]), _pad_b(params["bo"])

    # ---- phase 1: style-side convs, tiled over style rows ------------------
    gt_cl, h_cl = pl.pallas_call(
        _style_conv_kernel,
        out_shape=(jax.ShapeDtypeStruct((B, Cp, HWs_p), jnp.bfloat16),   # G^T
                   jax.ShapeDtypeStruct((B, HWs_p, Cp), jnp.bfloat16)),  # H
        grid_spec=pltpu.PrefetchScalarGridSpec(
            num_scalar_prefetch=0,
            grid=(B, nk),
            in_specs=[
                pl.BlockSpec((1, tk, Cp), lambda b, s: (b, s, 0)),   # style
                pl.BlockSpec((1, 1, Cp), lambda b, s: (b, 0, 0)),    # mean_y
                pl.BlockSpec((1, 1, Cp), lambda b, s: (b, 0, 0)),    # inv_y
                pl.BlockSpec((Cp, Cp), lambda b, s: (0, 0)),         # wg (bf16)
                pl.BlockSpec((1, Cp), lambda b, s: (0, 0)),          # bg
                pl.BlockSpec((Cp, Cp), lambda b, s: (0, 0)),         # wh (bf16)
                pl.BlockSpec((1, Cp), lambda b, s: (0, 0)),          # bh
            ],
            out_specs=[
                pl.BlockSpec((1, Cp, tk), lambda b, s: (b, 0, s)),   # G^T
                pl.BlockSpec((1, tk, Cp), lambda b, s: (b, s, 0)),   # H
            ]),
        compiler_params=pltpu.CompilerParams(
            dimension_semantics=("parallel", "parallel")),
    )(y_p, mean_y_p, inv_y_p, wg_p, bg_p, wh_p, bh_p)

    # ---- phase 2: flash attention + out_conv + residual --------------------
    f32, bf16 = 4, 2
    vmem_est = (2 * tq * Cp * f32            # content tile (double-buffered)
                + 2 * tq * Cp * f32          # output tile
                + 2 * 2 * tk * Cp * bf16     # G^T, H tiles (double-buffered)
                + 2 * 2 * Cp * Cp * bf16     # wf, wo (bf16)
                + tq * Cp * (bf16 + f32)     # F / acc scratch
                + 2 * tq * f32               # m / l scratch
                + 4 * tq * tk * f32)         # s / p temporaries
    # Generation-aware VMEM cap (v7x has 64 MiB per TC; v5e/v6e 128 MiB).
    try:
        vmem_cap = getattr(pltpu.get_tpu_info(), "vmem_capacity_bytes", 64 << 20)
    except Exception:  # pragma: no cover - conservative fallback
        vmem_cap = 64 << 20
    vmem_limit = int(min(max(2 * vmem_est, 32 << 20), (3 * vmem_cap) // 4))

    flops = int(2 * B * HWc_p * Cp * Cp          # f conv
                + 4 * B * HWc_p * HWs_p * Cp     # two attention matmuls
                + 2 * B * HWc_p * Cp * Cp)       # out conv
    bytes_accessed = int(B * HWc_p * Cp * f32                    # content in
                         + nq * B * HWs_p * Cp * bf16 * 2        # G^T + H streams
                         + 2 * Cp * Cp * bf16                    # wf + wo
                         + B * HWc_p * Cp * f32)                 # output
    cost = pl.CostEstimate(flops=flops,
                           transcendentals=int(B * HWc_p * HWs_p),
                           bytes_accessed=bytes_accessed)

    # NOTE (v7x): B * nq >= 2 keeps both TensorCores busy via the "parallel"
    # axes; for B == 1 and tiny feature maps prefer a smaller tq.
    kernel = functools.partial(_sanet_attn_kernel,
                               valid_last=valid_last, has_pad=has_pad)
    out_p = pl.pallas_call(
        kernel,
        out_shape=jax.ShapeDtypeStruct((B, HWc_p, Cp), jnp.float32),
        grid_spec=pltpu.PrefetchScalarGridSpec(
            num_scalar_prefetch=0,
            grid=(B, nq, nk),
            in_specs=[
                pl.BlockSpec((1, tq, Cp), lambda b, q, s: (b, q, 0)),  # content
                pl.BlockSpec((1, 1, Cp), lambda b, q, s: (b, 0, 0)),   # mean_x
                pl.BlockSpec((1, 1, Cp), lambda b, q, s: (b, 0, 0)),   # inv_x
                pl.BlockSpec((1, Cp, tk), lambda b, q, s: (b, 0, s)),  # G^T
                pl.BlockSpec((1, tk, Cp), lambda b, q, s: (b, s, 0)),  # H
                pl.BlockSpec((Cp, Cp), lambda b, q, s: (0, 0)),        # wf (bf16)
                pl.BlockSpec((1, Cp), lambda b, q, s: (0, 0)),         # bf
                pl.BlockSpec((Cp, Cp), lambda b, q, s: (0, 0)),        # wo (bf16)
                pl.BlockSpec((1, Cp), lambda b, q, s: (0, 0)),         # bo
            ],
            out_specs=pl.BlockSpec((1, tq, Cp), lambda b, q, s: (b, q, 0)),
            scratch_shapes=[
                pltpu.VMEM((tq, Cp), jnp.bfloat16),   # F tile
                pltpu.VMEM((tq, 1), jnp.float32),     # running max
                pltpu.VMEM((tq, 1), jnp.float32),     # running denom
                pltpu.VMEM((tq, Cp), jnp.float32),    # output accumulator
            ]),
        compiler_params=pltpu.CompilerParams(
            dimension_semantics=("parallel", "parallel", "arbitrary"),
            vmem_limit_bytes=vmem_limit),
        cost_estimate=cost,
    )(x_p, mean_x_p, inv_x_p, gt_cl, h_cl, wf_p, bf_p, wo_p, bo_p)

    out_cl = out_p[:, :HWc, :C]
    return jnp.transpose(out_cl.reshape(B, Hc, Wc, C), (0, 3, 1, 2))


# ---------------------------------------------------------------------------
# Pure-JAX NCHW reference mirroring the PyTorch module (f32).
# ---------------------------------------------------------------------------
def sanet_reference(content, style, params):
    def mvn(t):
        N, C, H, W = t.shape
        tf = t.reshape(N, C, -1)
        mean = tf.mean(axis=2)
        var = tf.var(axis=2, ddof=1) + EPS
        std = jnp.sqrt(var)
        return (t - mean[:, :, None, None]) / std[:, :, None, None]

    def conv1x1(t, w, b):
        return jnp.einsum("oc,nchw->nohw", w, t) + b[None, :, None, None]

    F = conv1x1(mvn(content), params["wf"], params["bf"])
    G = conv1x1(mvn(style), params["wg"], params["bg"])
    H = conv1x1(style, params["wh"], params["bh"])
    b, c, h, w = F.shape
    Fm = F.reshape(b, c, h * w).transpose(0, 2, 1)               # (b, HWc, c)
    Gm = G.reshape(b, c, -1)                                     # (b, c, HWs)
    S = jax.nn.softmax(jnp.einsum("bqc,bck->bqk", Fm, Gm), axis=-1)
    Hm = H.reshape(b, c, -1)                                     # (b, c, HWs)
    O = jnp.einsum("bck,bqk->bcq", Hm, S)                        # (b, c, HWc)
    _, _, hc, wc = content.shape
    O = O.reshape(b, c, hc, wc)
    O = conv1x1(O, params["wo"], params["bo"])
    return O + content


def make_params(key, in_planes):
    ks = jax.random.split(key, 8)
    s = 0.1
    return {
        "wf": s * jax.random.normal(ks[0], (in_planes, in_planes), jnp.float32),
        "bf": s * jax.random.normal(ks[1], (in_planes,), jnp.float32),
        "wg": s * jax.random.normal(ks[2], (in_planes, in_planes), jnp.float32),
        "bg": s * jax.random.normal(ks[3], (in_planes,), jnp.float32),
        "wh": s * jax.random.normal(ks[4], (in_planes, in_planes), jnp.float32),
        "bh": s * jax.random.normal(ks[5], (in_planes,), jnp.float32),
        "wo": s * jax.random.normal(ks[6], (in_planes, in_planes), jnp.float32),
        "bo": s * jax.random.normal(ks[7], (in_planes,), jnp.float32),
    }


if __name__ == "__main__":
    key = jax.random.PRNGKey(0)
    k_c, k_s, k_p = jax.random.split(key, 3)

    B, C = 2, 16
    Hc, Wc = 8, 8            # HWc = 64  -> 2 query tiles at tq=32
    Hs, Ws = 12, 12          # HWs = 144 -> 2 key tiles at tk=128, last masked

    content = jax.random.normal(k_c, (B, C, Hc, Wc), jnp.float32)
    style = jax.random.normal(k_s, (B, C, Hs, Ws), jnp.float32)
    params = make_params(k_p, C)

    # Small tiles so the test exercises multiple query tiles, the flash
    # (multi-key-tile) accumulator path and the last-tile key masking.
    out = sanet_forward(content, style, params, tq=32, tk=128)
    out = jax.block_until_ready(out)

    ref = jax.block_until_ready(sanet_reference(content, style, params))
    assert out.shape == (B, C, Hc, Wc)
    err = float(jnp.max(jnp.abs(out - ref)))
    # bf16 MXU operands with f32 accumulation -> relaxed tolerance vs the
    # pure-f32 reference.
    assert jnp.allclose(out, ref, rtol=3e-2, atol=3e-2), f"max abs err {err}"

    print("KERNEL_OK")
</pallas_src>

<mosaic_0001>
module attributes {stable_mosaic.version = 11 : i64} {
  func.func @_style_conv_kernel(%arg0: i32, %arg1: i32, %arg2: memref<1x128x128xf32, #tpu.memory_space<vmem>>, %arg3: memref<1x1x128xf32, #tpu.memory_space<vmem>>, %arg4: memref<1x1x128xf32, #tpu.memory_space<vmem>>, %arg5: memref<128x128xbf16, #tpu.memory_space<vmem>>, %arg6: memref<1x128xf32, #tpu.memory_space<vmem>>, %arg7: memref<128x128xbf16, #tpu.memory_space<vmem>>, %arg8: memref<1x128xf32, #tpu.memory_space<vmem>>, %arg9: memref<1x128x128xbf16, #tpu.memory_space<vmem>>, %arg10: memref<1x128x128xbf16, #tpu.memory_space<vmem>>) attributes {dimension_semantics = [#tpu.dimension_semantics<parallel>, #tpu.dimension_semantics<parallel>], iteration_bounds = array<i64: 2, 2>, scalar_prefetch = 0 : i64, scratch_operands = 0 : i64, tpu.core_type = #tpu.core_type<tc>, window_params = [{transform_indices = @transform_0, window_bounds = array<i64: 1, 128, 128>}, {transform_indices = @transform_1, window_bounds = array<i64: 1, 1, 128>}, {transform_indices = @transform_2, window_bounds = array<i64: 1, 1, 128>}, {pipeline_mode = #tpu.pipeline_mode<synchronous>, transform_indices = @transform_3, window_bounds = array<i64: 128, 128>}, {pipeline_mode = #tpu.pipeline_mode<synchronous>, transform_indices = @transform_4, window_bounds = array<i64: 1, 128>}, {pipeline_mode = #tpu.pipeline_mode<synchronous>, transform_indices = @transform_5, window_bounds = array<i64: 128, 128>}, {pipeline_mode = #tpu.pipeline_mode<synchronous>, transform_indices = @transform_6, window_bounds = array<i64: 1, 128>}, {transform_indices = @transform_7, window_bounds = array<i64: 1, 128, 128>}, {transform_indices = @transform_8, window_bounds = array<i64: 1, 128, 128>}]} {
    %c0 = arith.constant 0 : index
    %c0_0 = arith.constant 0 : index
    %c0_1 = arith.constant 0 : index
    %0 = vector.load %arg2[%c0, %c0_0, %c0_1] : memref<1x128x128xf32, #tpu.memory_space<vmem>>, vector<1x128x128xf32>
    %1 = vector.shape_cast %0 : vector<1x128x128xf32> to vector<128x128xf32>
    %c0_2 = arith.constant 0 : index
    %c0_3 = arith.constant 0 : index
    %c0_4 = arith.constant 0 : index
    %2 = vector.load %arg3[%c0_2, %c0_3, %c0_4] : memref<1x1x128xf32, #tpu.memory_space<vmem>>, vector<1x1x128xf32>
    %3 = vector.shape_cast %2 : vector<1x1x128xf32> to vector<1x128xf32>
    %4 = vector.broadcast %3 : vector<1x128xf32> to vector<128x128xf32>
    %5 = arith.subf %1, %4 : vector<128x128xf32>
    %c0_5 = arith.constant 0 : index
    %c0_6 = arith.constant 0 : index
    %c0_7 = arith.constant 0 : index
    %6 = vector.load %arg4[%c0_5, %c0_6, %c0_7] : memref<1x1x128xf32, #tpu.memory_space<vmem>>, vector<1x1x128xf32>
    %7 = vector.shape_cast %6 : vector<1x1x128xf32> to vector<1x128xf32>
    %8 = vector.broadcast %7 : vector<1x128xf32> to vector<128x128xf32>
    %9 = arith.mulf %5, %8 : vector<128x128xf32>
    %10 = arith.truncf %9 : vector<128x128xf32> to vector<128x128xbf16>
    %c0_8 = arith.constant 0 : index
    %c0_9 = arith.constant 0 : index
    %11 = vector.load %arg5[%c0_8, %c0_9] : memref<128x128xbf16, #tpu.memory_space<vmem>>, vector<128x128xbf16>
    %cst = arith.constant dense<0.000000e+00> : vector<128x128xf32>
    %12 = tpu.matmul %10, %11, %cst {dimension_numbers = #tpu.dot_dimension_numbers<[1], [0], [0], [1], [0, 0, 1, 1], [], []>} : vector<128x128xbf16>, vector<128x128xbf16>, vector<128x128xf32> -> vector<128x128xf32>
    %c0_10 = arith.constant 0 : index
    %c0_11 = arith.constant 0 : index
    %13 = vector.load %arg6[%c0_10, %c0_11] : memref<1x128xf32, #tpu.memory_space<vmem>>, vector<1x128xf32>
    %14 = vector.broadcast %13 : vector<1x128xf32> to vector<128x128xf32>
    %15 = arith.addf %12, %14 : vector<128x128xf32>
    %16 = arith.truncf %1 : vector<128x128xf32> to vector<128x128xbf16>
    %c0_12 = arith.constant 0 : index
    %c0_13 = arith.constant 0 : index
    %17 = vector.load %arg7[%c0_12, %c0_13] : memref<128x128xbf16, #tpu.memory_space<vmem>>, vector<128x128xbf16>
    %cst_14 = arith.constant dense<0.000000e+00> : vector<128x128xf32>
    %18 = tpu.matmul %16, %17, %cst_14 {dimension_numbers = #tpu.dot_dimension_numbers<[1], [0], [0], [1], [0, 0, 1, 1], [], []>} : vector<128x128xbf16>, vector<128x128xbf16>, vector<128x128xf32> -> vector<128x128xf32>
    %c0_15 = arith.constant 0 : index
    %c0_16 = arith.constant 0 : index
    %19 = vector.load %arg8[%c0_15, %c0_16] : memref<1x128xf32, #tpu.memory_space<vmem>>, vector<1x128xf32>
    %20 = vector.broadcast %19 : vector<1x128xf32> to vector<128x128xf32>
    %21 = arith.addf %18, %20 : vector<128x128xf32>
    %22 = tpu.transpose %15, [1, 0] : vector<128x128xf32> -> vector<128x128xf32>
    %23 = arith.truncf %22 : vector<128x128xf32> to vector<128x128xbf16>
    %c0_17 = arith.constant 0 : index
    %c0_18 = arith.constant 0 : index
    %c0_19 = arith.constant 0 : index
    %24 = vector.load %arg9[%c0_17, %c0_18, %c0_19] : memref<1x128x128xbf16, #tpu.memory_space<vmem>>, vector<1x128x128xbf16>
    %25 = vector.shape_cast %24 : vector<1x128x128xbf16> to vector<128x128xbf16>
    %26 = vector.shape_cast %23 : vector<128x128xbf16> to vector<1x128x128xbf16>
    tpu.vector_store %arg9[%c0_17, %c0_18, %c0_19], %26 {strides = array<i32>} : memref<1x128x128xbf16, #tpu.memory_space<vmem>>, vector<1x128x128xbf16>,
    %27 = arith.truncf %21 : vector<128x128xf32> to vector<128x128xbf16>
    %c0_20 = arith.constant 0 : index
    %c0_21 = arith.constant 0 : index
    %c0_22 = arith.constant 0 : index
    %28 = vector.load %arg10[%c0_20, %c0_21, %c0_22] : memref<1x128x128xbf16, #tpu.memory_space<vmem>>, vector<1x128x128xbf16>
    %29 = vector.shape_cast %28 : vector<1x128x128xbf16> to vector<128x128xbf16>
    %30 = vector.shape_cast %27 : vector<128x128xbf16> to vector<1x128x128xbf16>
    tpu.vector_store %arg10[%c0_20, %c0_21, %c0_22], %30 {strides = array<i32>} : memref<1x128x128xbf16, #tpu.memory_space<vmem>>, vector<1x128x128xbf16>,
    return
  }
  func.func @transform_0(%arg0: i32, %arg1: i32) -> (i32, i32, i32) {
    %c0_i32 = arith.constant 0 : i32
    %c0_i32_0 = arith.constant 0 : i32
    return %arg0, %arg1, %c0_i32 : i32, i32, i32
  }
  func.func @transform_1(%arg0: i32, %arg1: i32) -> (i32, i32, i32) {
    %c0_i32 = arith.constant 0 : i32
    %c0_i32_0 = arith.constant 0 : i32
    %c0_i32_1 = arith.constant 0 : i32
    return %arg0, %c0_i32, %c0_i32_0 : i32, i32, i32
  }
  func.func @transform_2(%arg0: i32, %arg1: i32) -> (i32, i32, i32) {
    %c0_i32 = arith.constant 0 : i32
    %c0_i32_0 = arith.constant 0 : i32
    %c0_i32_1 = arith.constant 0 : i32
    return %arg0, %c0_i32, %c0_i32_0 : i32, i32, i32
  }
  func.func @transform_3(%arg0: i32, %arg1: i32) -> (i32, i32) {
    %c0_i32 = arith.constant 0 : i32
    %c0_i32_0 = arith.constant 0 : i32
    %c0_i32_1 = arith.constant 0 : i32
    return %c0_i32, %c0_i32_0 : i32, i32
  }
  func.func @transform_4(%arg0: i32, %arg1: i32) -> (i32, i32) {
    %c0_i32 = arith.constant 0 : i32
    %c0_i32_0 = arith.constant 0 : i32
    %c0_i32_1 = arith.constant 0 : i32
    return %c0_i32, %c0_i32_0 : i32, i32
  }
  func.func @transform_5(%arg0: i32, %arg1: i32) -> (i32, i32) {
    %c0_i32 = arith.constant 0 : i32
    %c0_i32_0 = arith.constant 0 : i32
    %c0_i32_1 = arith.constant 0 : i32
    return %c0_i32, %c0_i32_0 : i32, i32
  }
  func.func @transform_6(%arg0: i32, %arg1: i32) -> (i32, i32) {
    %c0_i32 = arith.constant 0 : i32
    %c0_i32_0 = arith.constant 0 : i32
    %c0_i32_1 = arith.constant 0 : i32
    return %c0_i32, %c0_i32_0 : i32, i32
  }
  func.func @transform_7(%arg0: i32, %arg1: i32) -> (i32, i32, i32) {
    %c0_i32 = arith.constant 0 : i32
    %c0_i32_0 = arith.constant 0 : i32
    return %arg0, %c0_i32, %arg1 : i32, i32, i32
  }
  func.func @transform_8(%arg0: i32, %arg1: i32) -> (i32, i32, i32) {
    %c0_i32 = arith.constant 0 : i32
    %c0_i32_0 = arith.constant 0 : i32
    return %arg0, %arg1, %c0_i32 : i32, i32, i32
  }
}

</mosaic_0001>

<bundles_post_ra>
// kernel: tpu_custom_call.1
= control target key start
LH: loop header
LB: loop body
LE: loop exit
PB: predicated region body
PF: predicated region fallthrough
CT: control target
= control target key end

     0   :  { %s2515_s0 = inlined_call_operand.hbm [shape: f32[2,256,128], index: 0, kind: input, shape index: {}]   ;;  %s2516_s1 = inlined_call_operand.hbm [shape: f32[2,1,128], index: 1, kind: input, shape index: {}]   ;;  %s2517_s2 = inlined_call_operand.vmem [shape: f32[2,1,128], index: 2, kind: input, shape index: {}]   ;;  %s2518_s3 = inlined_call_operand.hbm [shape: bf16[128,128], index: 3, kind: input, shape index: {}]   ;;  %s2519_s4 = inlined_call_operand.vmem [shape: f32[1,128], index: 4, kind: input, shape index: {}]   ;;  %s2520_s5 = inlined_call_operand.hbm [shape: bf16[128,128], index: 5, kind: input, shape index: {}]   ;;  %s2521_s6 = inlined_call_operand.vmem [shape: f32[1,128], index: 6, kind: input, shape index: {}]   ;;  %s2522_s7 = inlined_call_operand.hbm [shape: bf16[2,128,256], index: 7, kind: output, shape index: {0}]   ;;  %s2523_s8 = inlined_call_operand.hbm [shape: bf16[2,256,128], index: 8, kind: output, shape index: {1}]  }
   0x1   :  { %2536 = sst [smem:[#allocation25_spill]] %s2517_s2 }
   0x2   :  { %2537 = sst [smem:[#allocation26_spill]] %s2518_s3 }
   0x3   :  { %2538 = sst [smem:[#allocation27_spill]] %s2519_s4 }
   0x4   :  { %2539 = sst [smem:[#allocation28_spill]] %s2520_s5 }
   0x5   :  { %2540 = sst [smem:[#allocation29_spill]] %s2521_s6 }
   0x6   :  { %2541 = sst [smem:[#allocation30_spill]] %s2522_s7 }
   0x7   :  { %2542 = sst [smem:[#allocation31_spill]] %s2523_s8 }
   0x8   :  { %14 = vsyncpa [#allocation3], 0 }
   0x9   :  { %16 = vsyncpa [#allocation3 + $0x1], 0 }
   0xa   :  { %17 = vsyncpa [#allocation6], 0 }
   0xb   :  { %19 = vsyncpa [#allocation6 + $0x1], 0 }
   0xc   :  { %20 = vsyncpa [#allocation9], 0 }
   0xd   :  { %21 = vsyncpa [#allocation4], 0 }
   0xe   :  { %23 = vsyncpa [#allocation4 + $0x1], 0 }
   0xf   :  { %24 = vsyncpa [#allocation12], 0 }
  0x10   :  { %26 = vsyncpa [#allocation12 + $0x1], 0  ;;  %s2037_s27 = smov 0   ;;  %s2039_s28 = smov 0  }
  0x11   :  { %s2041_s29 = smov 0   ;;  %s2043_s30 = smov 0  }
  0x12   :  { %s2045_s9 = smov 0   ;;  %s2047_s10 = smov 0  }
  0x13   :  { %s2049_s11 = smov 0   ;;  %s2051_s12 = smov 0  }
  0x14   :  { %s2053_s13 = smov 0   ;;  %s2055_s14 = smov 0  }
  0x15   :  { %s2057_s15 = smov 0  }
  0x16 LB: > { %2543 = sst [smem:[#allocation19_spill]] %s1949_s30  ;;  %s2093_s16 = sadd.s32 4294967295, %s1977_s15   ;;  %s1977_s15 = sphi %s2057_s15, %s32_s15   ;;  %s1973_s14 = sphi %s2055_s14, %s2589_s14   ;;  %s1969_s13 = sphi %s2053_s13, %s2588_s13   ;;  %s1965_s12 = sphi %s2051_s12, %s2587_s12   ;;  %s1961_s11 = sphi %s2049_s11, %s2586_s11   ;;  %s1957_s10 = sphi %s2047_s10, %s2585_s10   ;;  %s1953_s9 = sphi %s2045_s9, %s2584_s9   ;;  %s1949_s30 = sphi %s2043_s30, %s2583_s30   ;;  %s1945_s29 = sphi %s2041_s29, %s2582_s29   ;;  %s1941_s28 = sphi %s2039_s28, %s2581_s28   ;;  %s1937_s27 = sphi %s2037_s27, %s2580_s27  }
  0x17   : > { %2544 = sst [smem:[#allocation20_spill]] %s1961_s11  ;;  %s1252_s17 = sadd.s32 4294967294, %s1977_s15  }
  0x18   : > { %p66_p0 = scmp.ne.s32.totalorder %s1953_s9, %s1949_s30  ;;  %p2526_p1 = scmp.eq.s32.totalorder %s2093_s16, 0 }
  0x19   : > { %p234_p3 = scmp.eq.s32.totalorder %s1252_s17, 3  ;;  %p1253_p5 = scmp.ge.s32.totalorder %s1977_s15, 1 }
  0x1a   : > { %p2102_p4 = por %p2526_p1, %p66_p0  ;;  %p269_p7 = scmp.lt.s32.totalorder %s1977_s15, 5 }
  0x1b   : > { %p2107_p6 = por %p234_p3, %p66_p0  ;;  %s1979_s21 = smov [#allocation7]  }
  0x1c   : > { %p2112_p8 = pnand %p1253_p5, %p269_p7  ;;  %s281_s22 = sshll.u32 %s1979_s21, 4  ;;  %s282_s22 = int_to_ptr.vmem [resolvable:$true] %s281_s22 }
  0x1d   : > { %s2546_s19 = scalar_select %p2107_p6, 1, 0 }
  0x1e   : > { %p1567_p9 = pneg %p2112_p8  ;;  %s1980_s24 = smov [#allocation8]  }
  0x1f   : > { %2547 = sst [smem:[#allocation21_spill]] %s2546_s19  ;;  %s297_s25 = sshll.u32 %s1980_s24, 4  ;;  %s298_s25 = int_to_ptr.vmem [resolvable:$true] %s297_s25 }
  0x20   : > { %p2120_p10 = pnand %p1567_p9, %p2526_p1  ;;  %s1718_s26 = scalar_lea.vmem %s282_s22, 1024 }
  0x21   : > { %p1719_p12 = scmp.ne.s32.totalorder %s282_s22, %s1718_s26  ;;  %p1726_p3 = scmp.lt.s32.totalorder %s282_s22, %s282_s22 }
  0x22   : > { %p1709_p11 = pneg %p2120_p10  ;;  %p1727_p5 = scmp.lt.s32.totalorder %s1718_s26, %s1718_s26 }
  0x24   : > { %p1721_p13 = pnand %p1719_p12, %p1709_p11  ;;  %p1728_p7 = por %p1727_p5, %p1726_p3 }
  0x26   : > { %p1722_p0 = pneg %p1721_p13 }
  0x28   : > { %p1729_p9 = pnand %p1728_p7, %p1722_p0 }
  0x2a   : > { %1732 = shalt.err (!%p1729_p9)
}
  0x2b   : > { %s1981_s17 = smov 64   ;;  %s1982_s21 = smov 4  }
  0x2c   : > { %s2550_s3 = sld [smem:[#allocation26_spill]]  ;;  %s1744_s30 = scalar_lea.vmem %s298_s25, 1024 }
  0x2d   : > { %p1745_p1 = scmp.ne.s32.totalorder %s298_s25, %s1744_s30  ;;  %p1752_p2 = scmp.lt.s32.totalorder %s298_s25, %s298_s25 }
  0x2e   : > { %p1753_p6 = scmp.lt.s32.totalorder %s1744_s30, %s1744_s30 }
  0x2f   : > { %p1747_p12 = pnand %p1745_p1, %p1709_p11 }
  0x30   : > { %p1754_p3 = por %p1753_p6, %p1752_p2 }
  0x31   : > { %p1748_p13 = pneg %p1747_p12 }
  0x32   : > { %1570 = dma.hbm_to_vmem [thread:$0]  (!%p2120_p10), %s2550_s3, 1024, %s282_s22, [#allocation6], %s1981_s17, %s1981_s17, %s1982_s21  }
  0x33   : > { %p1755_p0 = pnand %p1754_p3, %p1748_p13 }
  0x35   : > { %1758 = shalt.err (!%p1755_p0)
}
  0x36   : > { %s2551_s5 = sld [smem:[#allocation28_spill]]  ;;  %s41_s30 = sadd.s32 1, %s1969_s13 }
  0x37   : > { %s44_s19 = sadd.s32 1, %s1973_s14  ;;  %p42_p1 = scmp.ge.s32.totalorder %s41_s30, 2 }
  0x38   : > { %s53_s22 = sadd.s32 1, %s1957_s10  ;;  %p60_p2 = scmp.ne.s32.totalorder %s1957_s10, %s1953_s9 }
  0x39   : > { %p61_p6 = scmp.eq.s32.totalorder %s1977_s15, 0  ;;  %s2591_s30 = smov (%p42_p1, %s41_s30), 0 }
  0x3a   : > { %2552 = sst [smem:[#allocation22_spill]] %s2591_s30  ;;  %s2593_s19 = smov (!%p42_p1, %s44_s19), %s1973_s14 }
  0x3b   : > { %s49_s7 = ssub.s32 %s1969_s13, %s2591_s30  ;;  %p2155_p11 = por %p61_p6, %p60_p2 }
  0x3c   : > { %1573 = dma.hbm_to_vmem [thread:$0]  (!%p2120_p10), %s2551_s5, 1024, %s298_s25, [#allocation9], %s1981_s17, %s1981_s17, %s1982_s21  }
  0x3d   : > { %p46_p10 = scmp.ge.s32.totalorder %s2593_s19, 2  ;;  %p2554_p5 = scmp.eq.s32.totalorder %s2093_s16, 3 }
  0x3e   : > { %p2534_p9 = scmp.lt.s32.totalorder %s1977_s15, 4  ;;  %s314_s17 = sand.u32 1, %s1957_s10  }
  0x3f   : > { %p2161_p7 = por %p2554_p5, %p60_p2  ;;  %s2595_s19 = smov (%p46_p10, %s2593_s19), 0 }
  0x40   : > { %2557 = sst [smem:[#allocation24_spill]] %s2595_s19  ;;  %s1257_s21 = sshll.u32 %s314_s17, 7 }
  0x41   : > { %s2555_s25 = scalar_select %p2161_p7, 1, 0 }
  0x42   : > { %s2171_s24 = ssub.s32 %s1973_s14, %s2595_s19  ;;  %s1258_s3 = sshll.u32 %s1969_s13, 4 }
  0x43   : > { %2556 = sst [smem:[#allocation23_spill]] %s2555_s25  ;;  %s50_s26 = sor.u32 %s49_s7, %s2171_s24 }
  0x44   : > { %p77_p12 = scmp.eq.s32.totalorder %s2171_s24, 0  ;;  %p51_p13 = scmp.eq.s32.totalorder %s50_s26, 0 }
  0x45   : > { %s1259_s5 = sshll.u32 %s1973_s14, 5  ;;  %s318_s30 = scalar_lea.vmem [#allocation2], %s1257_s21 }
  0x46   : > { %s327_s8 = sshll.u32 %s318_s30, 4  ;;  %s324_s11 = sadd.s32 %s1259_s5, %s1258_s3  ;;  %s328_s8 = int_to_ptr.vmem [resolvable:$true] %s327_s8 }
  0x47   : > { %s2178_s25 = scalar_select %p51_p13, %s1957_s10, %s53_s22  }
  0x48   : > { %s1260_s6 = sshll.u32 %s324_s11, 7  ;;  %p2184_p3 = pnand %p2534_p9, %p2155_p11 }
  0x49   : > { %s326_s7 = scalar_lea.hbm %s2515_s0, %s1260_s6  ;;  %s315_s26 = scalar_lea.sflag [#allocation3], %s314_s17 }
  0x4a   : > { %p1761_p0 = pneg %p2184_p3  ;;  %s1772_s30 = scalar_lea.vmem %s328_s8, 2048 }
  0x4b   : > { %p1773_p1 = scmp.ne.s32.totalorder %s328_s8, %s1772_s30  ;;  %s1983_s3 = smov [#allocation2]  }
  0x4c   : > { %s1777_s5 = sshll.u32 %s1983_s3, 4  ;;  %s1778_s5 = int_to_ptr.vmem [resolvable:$false] %s1777_s5 }
  0x4d   : > { %p1775_p2 = pnand %p1773_p1, %p1761_p0  ;;  %s1779_s11 = scalar_lea.vmem %s1778_s5, 4096 }
  0x4e   : > { %p1780_p11 = scmp.lt.s32.totalorder %s328_s8, %s1778_s5  ;;  %p1781_p5 = scmp.lt.s32.totalorder %s1779_s11, %s1772_s30 }
  0x4f   : > { %p1776_p10 = pneg %p1775_p2 }
  0x50   : > { %p1782_p13 = por %p1781_p5, %p1780_p11 }
  0x52   : > { %p1783_p9 = pnand %p1782_p13, %p1776_p10 }
  0x54   : > { %1786 = shalt.err (!%p1783_p9)
}
  0x55   : > { %s1984_s22 = smov 128   ;;  %s1985_s2 = smov 8  }
  0x56   : > { %1577 = dma.hbm_to_vmem [thread:$0]  (!%p2184_p3), %s326_s7, 2048, %s328_s8, %s315_s26, %s1984_s22, %s1984_s22, %s1985_s2  }
  0x57   : > { %s79_s6 = sadd.s32 1, %s1945_s29  ;;  %p86_p9 = scmp.ne.s32.totalorder %s1945_s29, %s1941_s28 }
  0x58   : > { %s2201_s19 = scalar_select %p77_p12, %s1945_s29, %s79_s6  }
  0x59   : > { %p88_p0 = por %p86_p9, %p61_p6  ;;  %p92_p1 = scmp.ne.s32.totalorder %s1941_s28, %s1937_s27 }
  0x5a   : > { %s337_s23 = sand.u32 1, %s1977_s15   ;;  %s339_s17 = sand.u32 1, %s1945_s29  }
  0x5b   : > { %p2559_p2 = scmp.eq.s32.totalorder %s2093_s16, 0  ;;  %s1261_s30 = sshll.u32 %s1973_s14, 4 }
  0x5c   : > { %s345_s4 = scalar_lea.hbm %s2516_s1, %s1261_s30  ;;  %s340_s8 = scalar_lea.vmem [#allocation5], %s339_s17 }
  0x5d   : > { %p2211_p10 = por %p92_p1, %p2559_p2  ;;  %s347_s7 = sshll.u32 %s340_s8, 4  ;;  %s348_s7 = int_to_ptr.vmem [resolvable:$true] %s347_s7 }
  0x5e   : > { %p2561_p12 = scmp.lt.s32.totalorder %s1977_s15, 4  ;;  %s338_s27 = scalar_lea.sflag [#allocation6], %s337_s23 }
  0x5f   : > { %s1800_s26 = scalar_lea.vmem %s348_s7, 16  ;;  %s1986_s11 = smov [#allocation5]  }
  0x60   : > { %p2221_p3 = pnand %p2561_p12, %p88_p0  ;;  %p1801_p11 = scmp.ne.s32.totalorder %s348_s7, %s1800_s26 }
  0x61   : > { %s1805_s22 = sshll.u32 %s1986_s11, 4  ;;  %s1806_s22 = int_to_ptr.vmem [resolvable:$false] %s1805_s22 }
  0x62   : > { %p1789_p6 = pneg %p2221_p3  ;;  %s1807_s2 = scalar_lea.vmem %s1806_s22, 32 }
  0x63   : > { %p1808_p9 = scmp.lt.s32.totalorder %s348_s7, %s1806_s22  ;;  %p1809_p1 = scmp.lt.s32.totalorder %s1807_s2, %s1800_s26 }
  0x64   : > { %p1803_p5 = pnand %p1801_p11, %p1789_p6 }
  0x65   : > { %p1810_p2 = por %p1809_p1, %p1808_p9 }
  0x66   : > { %p1804_p13 = pneg %p1803_p5 }
  0x68   : > { %p1811_p7 = pnand %p1810_p2, %p1804_p13 }
  0x6a   : > { %1814 = shalt.err (!%p1811_p7)
}
  0x6b   : > { %1580 = dma.hbm_to_vmem [thread:$0]  (!%p2221_p3), %s345_s4, 16, %s348_s7, %s338_s27  }
  0x6c   : > { %362 = sbr.rel (%p2112_p8) target bundleno = 555 (0x22b), region = 48  ;;  %s2232_s6 = sand.u32 (!%p2112_p8), 1, %s1953_s9  }
  0x6d   : > { %s1263_s23 = sshll.u32 (!%p2112_p8), %s2232_s6, 7  ;;  %s365_s17 = scalar_lea.sflag (!%p2112_p8), [#allocation3], %s2232_s6 }
  0x6e   : > { %s2236_s30 = scalar_lea.vmem (!%p2112_p8), [#allocation2], %s1263_s23 }
  0x71   : > { %1912 = dma.done.wait (%p2102_p4), %s365_s17, 2048  }
  0x72   : > { %1914 = vsyncadd (%p2102_p4), %s365_s17, 4294965248  ;;  %s373_s20 = sand.u32 1, %s2093_s16   ;;  %s375_s3 = sand.u32 1, %s1941_s28  }
  0x73   : > { %s374_s5 = scalar_lea.sflag [#allocation6], %s373_s20  ;;  %s376_s4 = scalar_lea.vmem [#allocation5], %s375_s3 }
  0x74   : > { %1916 = dma.done.wait (%p2211_p10), %s374_s5, 16  }
  0x75   : > { %1918 = vsyncadd (%p2211_p10), %s374_s5, 4294967280  ;;  %p2563_p8 = scmp.eq.s32.totalorder %s2093_s16, 0 }
  0x77   : > { %1920 = dma.done.wait (%p2563_p8), [#allocation6], 1024   ;;  %p2564_p7 = pmov %p2563_p8 }
  0x79   : > { %1922 = vsyncadd (%p2564_p7), [#allocation6], 4294966272  ;;  %p2565_p4 = pmov %p2564_p7 }
  0x7b   : > { %1924 = dma.done.wait (%p2565_p4), [#allocation9], 1024   ;;  %p2566_p0 = pmov %p2565_p4 }
  0x7c   : > { %p430_p12 = scmp.lt.s32.totalorder %s1965_s12, 1  ;;  %v1691_v0 = vld [vmem:[#allocation7 + $0x38] sm:$0xff]   ;;  %v1692_v1 = vld [vmem:[#allocation7 + $0x30] sm:$0xff]   ;;  %v1693_v2 = vld [vmem:[#allocation7 + $0x28] sm:$0xff]   ;;  %s2567_s7 = sld [smem:[#allocation25_spill]] }
  0x7d   : > { %1926 = vsyncadd (%p2566_p0), [#allocation9], 4294966272  ;;  %1487 = vmatprep.subr.bf16.mxu0 %v1691_v0  ;;  %v1694_v3 = vld [vmem:[#allocation7 + $0x20] sm:$0xff]   ;;  %v2263_v6 = vld [vmem:[%s376_s4] ss:$0 sm:$0xff]  ;;  %s2568_s26 = sld [smem:[#allocation27_spill]] }
  0x7e   : > { %s431_s18 = scalar_select %p430_p12, %s1965_s12, 1  ;;  %1488 = vmatpush3.bf16.msra.mxu0 %v1691_v0  ;;  %v435_v4 = vld [vmem:[%s2236_s30] sm:$0xff]  ;;  %v436_v5 = vld [vmem:[%s2236_s30 + $0x8] sm:$0xff]  ;;  %v1700_v16 = vld [vmem:[#allocation8 + $0x30] sm:$0xff]  }
  0x7f   : > { %1489 = vmatprep.subr.bf16.mxu0 %v1692_v1  ;;  %v458_v7 = vsub.f32 %v435_v4, %v2263_v6  ;;  %v459_v8 = vsub.f32 %v436_v5, %v2263_v6  ;;  %v673_v10 = vpack.c.bf16 %v436_v5, %v435_v4  ;;  %v1695_v13 = vld [vmem:[#allocation7 + $0x18] sm:$0xff]   ;;  %v1696_v17 = vld [vmem:[#allocation7 + $0x10] sm:$0xff]   ;;  %v1697_v20 = vld [vmem:[#allocation7 + $0x8] sm:$0xff]   ;;  %s2569_s2 = sld [smem:[#allocation29_spill]]  ;;  %s1266_s23 = sshll.u32 %s2232_s6, 6 }
  0x80   : > { %v1699_v15 = vld [vmem:[#allocation8 + $0x38] sm:$0xff]   ;;  %v2272_v18 = vld [vmem:[%s2236_s30 + $0x10] sm:$0xff]  ;;  %v2281_v23 = vld [vmem:[%s2236_s30 + $0x28] sm:$0xff]  ;;  %s2362_s17 = scalar_lea.vmem [#allocation11], %s1266_s23  ;;  %s2571_s20 = sld [smem:[#allocation23_spill]] }
  0x81   : > { %1535 = vmatprep.mubr.bf16.mxu1 %v673_v10  ;;  %v2275_v19 = vld [vmem:[%s2236_s30 + $0x18] sm:$0xff]  ;;  %1519 = vmatprep.subr.bf16.mxu1 %v1699_v15  ;;  %v2278_v21 = vld [vmem:[%s2236_s30 + $0x20] sm:$0xff]  ;;  %v1701_v22 = vld [vmem:[#allocation8 + $0x28] sm:$0xff]   ;;  %v460_v24 = vsub.f32 %v2272_v18, %v2263_v6  ;;  %v463_v27 = vsub.f32 %v2281_v23, %v2263_v6  ;;  %s1322_s3 = sshll.u32 %s1965_s12, 5  ;;  %s1079_s4 = sshll.u32 %s2362_s17, 4  ;;  %s2397_s4 = int_to_ptr.vmem [resolvable:$true] %s1079_s4 }
  0x82   : > { %s432_s24 = scalar_lea.vmem %s2567_s7, %s431_s18  ;;  %1490 = vmatpush3.bf16.msra.mxu0 %v1692_v1  ;;  %1520 = vmatpush3.bf16.msra.mxu1 %v1699_v15  ;;  %v461_v25 = vsub.f32 %v2275_v19, %v2263_v6  ;;  %v462_v26 = vsub.f32 %v2278_v21, %v2263_v6  ;;  %v1702_v28 = vld [vmem:[#allocation8 + $0x20] sm:$0xff]   ;;  %v2296_v34 = vld [vmem:[%s2236_s30 + $0x30] sm:$0xff]  ;;  %v2299_v35 = vld [vmem:[%s2236_s30 + $0x38] sm:$0xff]  ;;  %v674_v4 = vpack.c.bf16 %v2275_v19, %v2272_v18  ;;  %s1047_s27 = scalar_lea.sflag [#allocation12], %s2232_s6 }
  0x83   : > { %1491 = vmatprep.subr.bf16.mxu0 %v1693_v2  ;;  %v2267_v9 = vld [vmem:[%s432_s24] ss:$0 sm:$0xff]  ;;  %1521 = vmatprep.subr.bf16.mxu1 %v1700_v16  ;;  %v1698_v29 = vld [vmem:[#allocation7] sm:$0xff]   ;;  %v464_v40 = vsub.f32 %v2296_v34, %v2263_v6  ;;  %v465_v41 = vsub.f32 %v2299_v35, %v2263_v6  ;;  %v1704_v45 = vld [vmem:[#allocation8 + $0x10] sm:$0xff]   ;;  %v675_v10 = vpack.c.bf16 %v2281_v23, %v2278_v21  ;;  %s2572_s24 = sld [smem:[#allocation31_spill]]  ;;  %s1987_s11 = smov [#allocation11]  }
  0x84   : > { %v481_v11 = vmul.f32 %v2267_v9, %v458_v7  ;;  %v482_v12 = vmul.f32 %v2267_v9, %v459_v8  ;;  %v483_v30 = vmul.f32 %v2267_v9, %v460_v24  ;;  %v484_v31 = vmul.f32 %v2267_v9, %v461_v25  ;;  %v1703_v36 = vld [vmem:[#allocation8 + $0x18] sm:$0xff]   ;;  %v444_v38 = vld [vmem:[%s2236_s30 + $0x48] sm:$0xff]  ;;  %v445_v50 = vld [vmem:[%s2236_s30 + $0x50] sm:$0xff]  ;;  %s1819_s22 = sshll.u32 %s1987_s11, 4  ;;  %s1820_s22 = int_to_ptr.vmem [resolvable:$false] %s1819_s22 }
  0x85   : > { %v485_v32 = vmul.f32 %v2267_v9, %v462_v26  ;;  %v486_v33 = vmul.f32 %v2267_v9, %v463_v27  ;;  %v443_v37 = vld [vmem:[%s2236_s30 + $0x40] sm:$0xff]  ;;  %v467_v44 = vsub.f32 %v444_v38, %v2263_v6  ;;  %v487_v46 = vmul.f32 %v2267_v9, %v464_v40  ;;  %v446_v51 = vld [vmem:[%s2236_s30 + $0x58] sm:$0xff]  ;;  %v1705_v52 = vld [vmem:[#allocation8 + $0x8] sm:$0xff]   ;;  %p1822_p5 = scmp.lt.s32.totalorder %s2397_s4, %s1820_s22 }
  0x86   : > { %1492 = vmatpush3.bf16.msra.mxu0 %v1693_v2  ;;  %v497_v14 = vpack.c.bf16 %v482_v12, %v481_v11  ;;  %1522 = vmatpush3.bf16.msra.mxu1 %v1700_v16  ;;  %v498_v39 = vpack.c.bf16 %v484_v31, %v483_v30  ;;  %v466_v43 = vsub.f32 %v443_v37, %v2263_v6  ;;  %v447_v53 = vld [vmem:[%s2236_s30 + $0x60] sm:$0xff]  ;;  %v448_v54 = vld [vmem:[%s2236_s30 + $0x68] sm:$0xff]  ;;  %v449_v2 = vld [vmem:[%s2236_s30 + $0x70] sm:$0xff]  ;;  %p2573_p3 = scmp.ne.s32.totalorder %s2571_s20, 0 }
  0x87   : > { %1493 = vmatprep.subr.bf16.mxu0 %v1694_v3  ;;  %1523 = vmatprep.subr.bf16.mxu1 %v1701_v22  ;;  %v499_v42 = vpack.c.bf16 %v486_v33, %v485_v32  ;;  %v488_v47 = vmul.f32 %v2267_v9, %v465_v41  ;;  %v490_v49 = vmul.f32 %v2267_v9, %v467_v44  ;;  %v1706_v61 = vld [vmem:[#allocation8] sm:$0xff]  }
  0x88   : > { %1503 = vmatprep.mubr.bf16.mxu0 %v497_v14  ;;  %v489_v48 = vmul.f32 %v2267_v9, %v466_v43  ;;  %v468_v56 = vsub.f32 %v445_v50, %v2263_v6  ;;  %v469_v57 = vsub.f32 %v446_v51, %v2263_v6  ;;  %v470_v59 = vsub.f32 %v447_v53, %v2263_v6 }
  0x89   : > { %v500_v55 = vpack.c.bf16 %v488_v47, %v487_v46  ;;  %v471_v60 = vsub.f32 %v448_v54, %v2263_v6  ;;  %v472_v7 = vsub.f32 %v449_v2, %v2263_v6  ;;  %v676_v14 = vpack.c.bf16 %v2299_v35, %v2296_v34  ;;  %v2351_v35 = vld [vmem:[%s2569_s2] ss:$0 sm:$0xff]  ;;  %s1821_s2 = scalar_lea.vmem %s1820_s22, 2048 }
  0x8a   : > { %1494 = vmatpush3.bf16.msra.mxu0 %v1694_v3  ;;  %1524 = vmatpush3.bf16.msra.mxu1 %v1701_v22  ;;  %v501_v58 = vpack.c.bf16 %v490_v49, %v489_v48  ;;  %v491_v62 = vmul.f32 %v2267_v9, %v468_v56  ;;  %v492_v63 = vmul.f32 %v2267_v9, %v469_v57  ;;  %v450_v3 = vld [vmem:[%s2236_s30 + $0x78] sm:$0xff]  ;;  %s2570_s30 = sld [smem:[#allocation20_spill]] }
  0x8b   : > { %1495 = vmatprep.subr.bf16.mxu0 %v1695_v13  ;;  %1525 = vmatprep.subr.bf16.mxu1 %v1702_v28  ;;  %v493_v0 = vmul.f32 %v2267_v9, %v470_v59  ;;  %v494_v1 = vmul.f32 %v2267_v9, %v471_v60  ;;  %v473_v8 = vsub.f32 %v450_v3, %v2263_v6 }
  0x8c   : > { %v502_v5 = vpack.c.bf16 %v492_v63, %v491_v62  ;;  %v495_v12 = vmul.f32 %v2267_v9, %v472_v7  ;;  %v677_v16 = vpack.c.bf16 %v444_v38, %v443_v37  ;;  %v678_v6 = vpack.c.bf16 %v446_v51, %v445_v50 }
  0x8d   : > { %v503_v11 = vpack.c.bf16 %v494_v1, %v493_v0  ;;  %v680_v18 = vpack.c.bf16 %v450_v3, %v449_v2 }
  0x8e   : > { %1496 = vmatpush3.bf16.msra.mxu0 %v1695_v13  ;;  %1526 = vmatpush3.bf16.msra.mxu1 %v1702_v28  ;;  %v496_v13 = vmul.f32 %v2267_v9, %v473_v8  ;;  %v2340_v9 = vld [vmem:[%s2568_s26] ss:$0 sm:$0xff]  ;;  %s1815_s26 = scalar_lea.vmem %s2397_s4, 1024 }
  0x8f   : > { %1497 = vmatprep.subr.bf16.mxu0 %v1696_v17  ;;  %1527 = vmatprep.subr.bf16.mxu1 %v1703_v36  ;;  %p1816_p10 = scmp.ne.s32.totalorder %s2397_s4, %s1815_s26  ;;  %p1823_p13 = scmp.lt.s32.totalorder %s1821_s2, %s1815_s26 }
  0x90   : > { %v504_v15 = vpack.c.bf16 %v496_v13, %v495_v12  ;;  %s1324_s5 = sshll.u32 %s2570_s30, 4 }
  0x91   : > { %s1076_s18 = sadd.s32 %s1324_s5, %s1322_s3  ;;  %p1817_p6 = pnand %p1816_p10, %p2573_p3 }
  0x92   : > { %1498 = vmatpush3.bf16.msra.mxu0 %v1696_v17  ;;  %1528 = vmatpush3.bf16.msra.mxu1 %v1703_v36  ;;  %v679_v17 = vpack.c.bf16 %v448_v54, %v447_v53  ;;  %s1326_s21 = sshll.u32 %s1076_s18, 6  ;;  %p1824_p9 = por %p1823_p13, %p1822_p5 }
  0x93   : > { %1499 = vmatprep.subr.bf16.mxu0 %v1697_v20  ;;  %1529 = vmatprep.subr.bf16.mxu1 %v1704_v45  ;;  %s2402_s16 = scalar_lea.hbm %s2572_s24, %s1326_s21  ;;  %p1818_p11 = pneg %p1817_p6 }
  0x95   : > { %p1825_p1 = pnand %p1824_p9, %p1818_p11 }
  0x96   : > { %1500 = vmatpush3.bf16.msra.mxu0 %v1697_v20  ;;  %1530 = vmatpush3.bf16.msra.mxu1 %v1704_v45 }
  0x97   : > { %1501 = vmatprep.subr.bf16.mxu0 %v1698_v29  ;;  %1531 = vmatprep.subr.bf16.mxu1 %v1705_v52 }
  0x9a   : > { %1502 = vmatpush3.bf16.msra.mxu0 %v1698_v29  ;;  %1532 = vmatpush3.bf16.msra.mxu1 %v1705_v52 }
  0x9b   : > { %1533 = vmatprep.subr.bf16.mxu1 %v1706_v61 }
  0x9d   : > { %1504 = vmatmul.mubr.bf16.vlgmr.msra.gmra.mxu0 %v498_v39 }
  0x9e   : > { %1507 = vmatprep.mubr.bf16.mxu0 %v499_v42  ;;  %1534 = vmatpush3.bf16.msra.mxu1 %v1706_v61 }
  0xa1   : > { %1536 = vmatmul.mubr.bf16.vlgmr.msra.gmra.mxu1 %v674_v4 }
  0xa2   : > { %1539 = vmatprep.mubr.bf16.mxu1 %v675_v10 }
  0xa5   : > { %1508 = vmatmul.mubr.bf16.gmra.mxu0 %v500_v55 }
  0xa6   : > { %1511 = vmatprep.mubr.bf16.mxu0 %v501_v58 }
  0xa9   : > { %1540 = vmatmul.mubr.bf16.gmra.mxu1 %v676_v14 }
  0xaa   : > { %1543 = vmatprep.mubr.bf16.mxu1 %v677_v16 }
  0xad   : > { %1512 = vmatmul.mubr.bf16.gmra.mxu0 %v502_v5 }
  0xae   : > { %1515 = vmatprep.mubr.bf16.mxu0 %v503_v11 }
  0xb1   : > { %1544 = vmatmul.mubr.bf16.gmra.mxu1 %v678_v6 }
  0xb2   : > { %1547 = vmatprep.mubr.bf16.mxu1 %v679_v17 }
  0xb5   : > { %1516 = vmatmul.mubr.bf16.gmra.mxu0 %v504_v15 }
  0xb9   : > { %1548 = vmatmul.mubr.bf16.gmra.mxu1 %v680_v18 }
 0x15d   : > { %v1505_v19 = vpop.f32.mrf.mxu0 }
 0x15e   : > { %v619_v26 = vadd.f32 %v1505_v19, %v2340_v9 }
 0x15f   : > { %v610_v20 = vpop.f32.mrf.mxu0 }
 0x160   : > { %v611_v21 = vadd.f32 %v2340_v9, %v610_v20 }
 0x161   : > { %v1506_v22 = vpop.f32.mrf.mxu0  ;;  %v1537_v33 = vpop.f32.mrf.mxu1 }
 0x162   : > { %849 = vxpose.xlu0.b32.start [1/16] %v611_v21, 128  ;;  %v622_v28 = vadd.f32 %v1506_v22, %v2340_v9  ;;  %v795_v37 = vadd.f32 %v1537_v33, %v2351_v35 }
 0x163   : > { %v613_v23 = vpop.f32.mrf.mxu0  ;;  %v786_v36 = vpop.f32.mrf.mxu1 }
 0x164   : > { %v614_v24 = vadd.f32 %v2340_v9, %v613_v23  ;;  %v787_v41 = vadd.f32 %v2351_v35, %v786_v36 }
 0x165   : > { %v1509_v25 = vpop.f32.mrf.mxu0  ;;  %v1538_v39 = vpop.f32.mrf.mxu1 }
 0x166   : > { %850 = vxpose.xlu0.b32.cont [2/16] %v614_v24, 128  ;;  %v635_v38 = vadd.f32 %v1509_v25, %v2340_v9  ;;  %v798_v42 = vadd.f32 %v1538_v39, %v2351_v35 }
 0x167   : > { %v626_v27 = vpop.f32.mrf.mxu0  ;;  %v789_v43 = vpop.f32.mrf.mxu1 }
 0x168   : > { %v627_v30 = vadd.f32 %v2340_v9, %v626_v27  ;;  %v1409_v44 = vpack.c.bf16 %v798_v42, %v795_v37  ;;  %v790_v45 = vadd.f32 %v2351_v35, %v789_v43 }
 0x169   : > { %v1510_v29 = vpop.f32.mrf.mxu0  ;;  %v1541_v47 = vpop.f32.mrf.mxu1 }
 0x16a   : > { %851 = vxpose.xlu0.b32.cont [3/16] %v619_v26, 128  ;;  %v638_v46 = vadd.f32 %v1510_v29, %v2340_v9  ;;  %1448 = vst [vmem:[%s2362_s17 + $0x8] sm:$0xff] %v1409_v44   ;;  %v1404_v49 = vpack.c.bf16 %v790_v45, %v787_v41  ;;  %v811_v51 = vadd.f32 %v1541_v47, %v2351_v35 }
 0x16b   : > { %v629_v31 = vpop.f32.mrf.mxu0  ;;  %v802_v50 = vpop.f32.mrf.mxu1 }
 0x16c   : > { %v630_v32 = vadd.f32 %v2340_v9, %v629_v31  ;;  %1405 = vst [vmem:[%s2362_s17] sm:$0xff] %v1404_v49   ;;  %v803_v55 = vadd.f32 %v2351_v35, %v802_v50 }
 0x16d   : > { %v1513_v34 = vpop.f32.mrf.mxu0  ;;  %v1542_v53 = vpop.f32.mrf.mxu1 }
 0x16e   : > { %852 = vxpose.xlu0.b32.cont [4/16] %v622_v28, 128  ;;  %v814_v56 = vadd.f32 %v1542_v53, %v2351_v35  ;;  %v651_v2 = vadd.f32 %v1513_v34, %v2340_v9 }
 0x16f   : > { %v642_v40 = vpop.f32.mrf.mxu0  ;;  %v805_v57 = vpop.f32.mrf.mxu1 }
 0x170   : > { %v643_v52 = vadd.f32 %v2340_v9, %v642_v40  ;;  %v1419_v58 = vpack.c.bf16 %v814_v56, %v811_v51  ;;  %v806_v59 = vadd.f32 %v2351_v35, %v805_v57 }
 0x171   : > { %v1514_v48 = vpop.f32.mrf.mxu0  ;;  %v1545_v61 = vpop.f32.mrf.mxu1 }
 0x172   : > { %853 = vxpose.xlu0.b32.cont [5/16] %v627_v30, 128  ;;  %1450 = vst [vmem:[%s2362_s17 + $0x18] sm:$0xff] %v1419_v58   ;;  %v1414_v63 = vpack.c.bf16 %v806_v59, %v803_v55  ;;  %v827_v1 = vadd.f32 %v1545_v61, %v2351_v35  ;;  %v654_v12 = vadd.f32 %v1514_v48, %v2340_v9 }
 0x173   : > { %v645_v54 = vpop.f32.mrf.mxu0  ;;  %v818_v0 = vpop.f32.mrf.mxu1 }
 0x174   : > { %v646_v60 = vadd.f32 %v2340_v9, %v645_v54  ;;  %1449 = vst [vmem:[%s2362_s17 + $0x10] sm:$0xff] %v1414_v63   ;;  %v819_v5 = vadd.f32 %v2351_v35, %v818_v0 }
 0x175   : > { %v1517_v62 = vpop.f32.mrf.mxu0  ;;  %v1546_v3 = vpop.f32.mrf.mxu1 }
 0x176   : > { %854 = vxpose.xlu0.b32.cont [6/16] %v630_v32, 128  ;;  %v830_v7 = vadd.f32 %v1546_v3, %v2351_v35  ;;  %v667_v27 = vadd.f32 %v1517_v62, %v2340_v9 }
 0x177   : > { %v658_v4 = vpop.f32.mrf.mxu0  ;;  %v821_v8 = vpop.f32.mrf.mxu1 }
 0x178   : > { %v1429_v10 = vpack.c.bf16 %v830_v7, %v827_v1  ;;  %v822_v11 = vadd.f32 %v2351_v35, %v821_v8  ;;  %v659_v17 = vadd.f32 %v2340_v9, %v658_v4 }
 0x179   : > { %v1549_v13 = vpop.f32.mrf.mxu1  ;;  %v1518_v14 = vpop.f32.mrf.mxu0 }
 0x17a   : > { %855 = vxpose.xlu0.b32.cont [7/16] %v635_v38, 128  ;;  %1452 = vst [vmem:[%s2362_s17 + $0x28] sm:$0xff] %v1429_v10   ;;  %v1424_v15 = vpack.c.bf16 %v822_v11, %v819_v5  ;;  %v843_v6 = vadd.f32 %v1549_v13, %v2351_v35  ;;  %v670_v28 = vadd.f32 %v1518_v14, %v2340_v9 }
 0x17b   : > { %v834_v16 = vpop.f32.mrf.mxu1  ;;  %v661_v19 = vpop.f32.mrf.mxu0 }
 0x17c   : > { %1451 = vst [vmem:[%s2362_s17 + $0x20] sm:$0xff] %v1424_v15   ;;  %v835_v20 = vadd.f32 %v2351_v35, %v834_v16  ;;  %v662_v25 = vadd.f32 %v2340_v9, %v661_v19 }
 0x17d   : > { %v1550_v18 = vpop.f32.mrf.mxu1 }
 0x17e   : > { %856 = vxpose.xlu0.b32.cont [8/16] %v638_v46, 128  ;;  %v846_v21 = vadd.f32 %v1550_v18, %v2351_v35 }
 0x17f   : > { %v837_v22 = vpop.f32.mrf.mxu1 }
 0x180   : > { %v1439_v23 = vpack.c.bf16 %v846_v21, %v843_v6  ;;  %v838_v24 = vadd.f32 %v2351_v35, %v837_v22 }
 0x182   : > { %857 = vxpose.xlu0.b32.cont [9/16] %v643_v52, 128  ;;  %1454 = vst [vmem:[%s2362_s17 + $0x38] sm:$0xff] %v1439_v23   ;;  %v1434_v26 = vpack.c.bf16 %v838_v24, %v835_v20 }
 0x184   : > { %1453 = vst [vmem:[%s2362_s17 + $0x30] sm:$0xff] %v1434_v26  }
 0x186   : > { %858 = vxpose.xlu0.b32.cont [10/16] %v646_v60, 128 }
 0x18a   : > { %859 = vxpose.xlu0.b32.cont [11/16] %v651_v2, 128 }
 0x18e   : > { %860 = vxpose.xlu0.b32.cont [12/16] %v654_v12, 128 }
 0x192   : > { %861 = vxpose.xlu0.b32.cont [13/16] %v659_v17, 128 }
 0x196   : > { %862 = vxpose.xlu0.b32.cont [14/16] %v662_v25, 128 }
 0x19a   : > { %863 = vxpose.xlu0.b32.cont [15/16] %v667_v27, 128 }
 0x19e   : > { %864 = vxpose.xlu0.b32.end [16/16] %v670_v28, 128 }
 0x19f   : > { %1828 = shalt.err (!%p1825_p1)
}
 0x1a0   : > { %s1829_s17 = scalar_lea.hbm %s2402_s16, 1024  ;;  %s1833_s21 = scalar_lea.hbm %s2572_s24, 4096 }
 0x1a1   : > { %p1830_p2 = scmp.ne.s32.totalorder %s2402_s16, %s1829_s17  ;;  %p1834_p4 = scmp.lt.s32.totalorder %s2402_s16, %s2572_s24 }
 0x1a2   : > { %p1835_p0 = scmp.lt.s32.totalorder %s1833_s21, %s1829_s17 }
 0x1a3   : > { %p1831_p8 = pnand %p1830_p2, %p2573_p3 }
 0x1a4   : > { %p1836_p12 = por %p1835_p0, %p1834_p4 }
 0x1a5   : > { %p1832_p7 = pneg %p1831_p8 }
 0x1a7   : > { %p1837_p10 = pnand %p1836_p12, %p1832_p7 }
 0x1a9   : > { %1840 = shalt.err (!%p1837_p10)
}
 0x1aa   : > { %s1988_s26 = smov 64   ;;  %s1989_s11 = smov 4  }
 0x1ab   : > { %1564 = dma.vmem_to_hbm [thread:$0]  (%p2573_p3), %s2397_s4, 1024, %s2402_s16, %s1047_s27, %s1988_s26, %s1988_s26, %s1989_s11  }
 0x1ac   : > { %s2432_s22 = scalar_lea.vmem [#allocation10], %s1266_s23  ;;  %s1058_s23 = sadd.s32 %s2570_s30, %s1322_s3 }
 0x1ad   : > { %s1061_s4 = sshll.u32 %s2432_s22, 4  ;;  %s1323_s16 = sshll.u32 %s1058_s23, 6  ;;  %s2445_s4 = int_to_ptr.vmem [resolvable:$true] %s1061_s4 }
 0x1ae   : > { %s2574_s17 = sld [smem:[#allocation30_spill]]  ;;  %s1042_s18 = scalar_lea.sflag [#allocation4], %s2232_s6 }
 0x1af   : > { %s1841_s21 = scalar_lea.vmem %s2445_s4, 1024  ;;  %s1990_s12 = smov [#allocation10]  }
 0x1b0   : > { %p1842_p6 = scmp.ne.s32.totalorder %s2445_s4, %s1841_s21  ;;  %s1845_s30 = sshll.u32 %s1990_s12, 4  ;;  %s1846_s30 = int_to_ptr.vmem [resolvable:$false] %s1845_s30 }
 0x1b1   : > { %s1847_s3 = scalar_lea.vmem %s1846_s30, 2048  ;;  %p1848_p13 = scmp.lt.s32.totalorder %s2445_s4, %s1846_s30 }
 0x1b2   : > { %p1843_p11 = pnand %p1842_p6, %p2573_p3  ;;  %p1849_p9 = scmp.lt.s32.totalorder %s1847_s3, %s1841_s21 }
 0x1b4   : > { %s2450_s5 = scalar_lea.hbm %s2574_s17, %s1323_s16  ;;  %p1844_p5 = pneg %p1843_p11 }
 0x1b5   : > { %p1850_p1 = por %p1849_p9, %p1848_p13 }
 0x1b7   : > { %p1851_p2 = pnand %p1850_p1, %p1844_p5 }
 0x1de   : > { %v865_v9 = vpop.trf.xlu0 }
 0x1e2   : > { %v866_v29 = vpop.trf.xlu0 }
 0x1e3   : > { %v1364_v30 = vpack.c.bf16 %v866_v29, %v865_v9 }
 0x1e5   : > { %1365 = vst [vmem:[%s2432_s22] sm:$0xff] %v1364_v30  }
 0x1e6   : > { %v867_v31 = vpop.trf.xlu0 }
 0x1ea   : > { %v868_v32 = vpop.trf.xlu0 }
 0x1eb   : > { %v1369_v33 = vpack.c.bf16 %v868_v32, %v867_v31 }
 0x1ed   : > { %1441 = vst [vmem:[%s2432_s22 + $0x8] sm:$0xff] %v1369_v33  }
 0x1ee   : > { %v869_v34 = vpop.trf.xlu0 }
 0x1f2   : > { %v870_v35 = vpop.trf.xlu0 }
 0x1f3   : > { %v1374_v36 = vpack.c.bf16 %v870_v35, %v869_v34 }
 0x1f5   : > { %1442 = vst [vmem:[%s2432_s22 + $0x10] sm:$0xff] %v1374_v36  }
 0x1f6   : > { %v871_v37 = vpop.trf.xlu0 }
 0x1fa   : > { %v872_v38 = vpop.trf.xlu0 }
 0x1fb   : > { %v1379_v39 = vpack.c.bf16 %v872_v38, %v871_v37 }
 0x1fd   : > { %1443 = vst [vmem:[%s2432_s22 + $0x18] sm:$0xff] %v1379_v39  }
 0x1fe   : > { %v873_v40 = vpop.trf.xlu0 }
 0x202   : > { %v874_v41 = vpop.trf.xlu0 }
 0x203   : > { %v1384_v42 = vpack.c.bf16 %v874_v41, %v873_v40 }
 0x205   : > { %1444 = vst [vmem:[%s2432_s22 + $0x20] sm:$0xff] %v1384_v42  }
 0x206   : > { %v875_v43 = vpop.trf.xlu0 }
 0x20a   : > { %v876_v44 = vpop.trf.xlu0 }
 0x20b   : > { %v1389_v45 = vpack.c.bf16 %v876_v44, %v875_v43 }
 0x20d   : > { %1445 = vst [vmem:[%s2432_s22 + $0x28] sm:$0xff] %v1389_v45  }
 0x20e   : > { %v877_v46 = vpop.trf.xlu0 }
 0x212   : > { %v878_v47 = vpop.trf.xlu0 }
 0x213   : > { %v1394_v48 = vpack.c.bf16 %v878_v47, %v877_v46 }
 0x215   : > { %1446 = vst [vmem:[%s2432_s22 + $0x30] sm:$0xff] %v1394_v48  }
 0x216   : > { %v879_v49 = vpop.trf.xlu0 }
 0x21a   : > { %v880_v50 = vpop.trf.xlu0 }
 0x21b   : > { %v1399_v51 = vpack.c.bf16 %v880_v50, %v879_v49 }
 0x21d   : > { %1447 = vst [vmem:[%s2432_s22 + $0x38] sm:$0xff] %v1399_v51  }
 0x21e   : > { %1854 = shalt.err (!%p1851_p2)
}
 0x21f   : > { %s1855_s8 = scalar_lea.hbm %s2450_s5, 1024  ;;  %s1859_s23 = scalar_lea.hbm %s2574_s17, 4096 }
 0x220   : > { %p1856_p8 = scmp.ne.s32.totalorder %s2450_s5, %s1855_s8  ;;  %p1860_p0 = scmp.lt.s32.totalorder %s2450_s5, %s2574_s17 }
 0x221   : > { %p1861_p12 = scmp.lt.s32.totalorder %s1859_s23, %s1855_s8 }
 0x222   : > { %p1857_p7 = pnand %p1856_p8, %p2573_p3 }
 0x223   : > { %p1862_p10 = por %p1861_p12, %p1860_p0 }
 0x224   : > { %p1858_p4 = pneg %p1857_p7 }
 0x226   : > { %p1863_p6 = pnand %p1862_p10, %p1858_p4 }
 0x228   : > { %1866 = shalt.err (!%p1863_p6)
}
 0x229   : > { %s1991_s2 = smov 128  }
 0x22a   : > { %1563 = dma.vmem_to_hbm [thread:$0]  (%p2573_p3), %s2445_s4, 1024, %s2450_s5, %s1042_s18, %s1988_s26, %s1991_s2, %s1989_s11  }
 0x22b PF: > { %s2575_s21 = sld [smem:[#allocation19_spill]]  ;;  %p1593_p11 = scmp.ge.s32.totalorder %s1977_s15, 2 }
 0x22c   : > { %s2576_s12 = sld [smem:[#allocation21_spill]] }
 0x231   : > { %s1094_s30 = sand.u32 1, %s2575_s21  }
 0x232   : > { %p2577_p5 = scmp.ne.s32.totalorder %s2576_s12, 0  ;;  %s1095_s3 = scalar_lea.sflag [#allocation4], %s1094_s30 }
 0x234   : > { %p1582_p13 = pnand %p1593_p11, %p2577_p5 }
 0x236   : > { %p1583_p9 = pneg %p1582_p13 }
 0x238   : > { %1928 = dma.done.wait (%p1583_p9), %s1095_s3, 1024  }
 0x239   : > { %1930 = vsyncadd (%p1583_p9), %s1095_s3, 4294966272  ;;  %s1104_s20 = scalar_lea.sflag [#allocation12], %s1094_s30 }
 0x23a   : > { %1932 = dma.done.wait (%p1583_p9), %s1104_s20, 1024  }
 0x23b   : > { %1934 = vsyncadd (%p1583_p9), %s1104_s20, 4294966272  ;;  %s32_s15 = sadd.s32 1, %s1977_s15   ;;  %s2578_s6 = sld [smem:[#allocation22_spill]] }
 0x23c   : > { %p29_p1 = scmp.ge.s32.totalorder %s32_s15, 6   ;;  %s2579_s26 = sld [smem:[#allocation24_spill]] }
 0x23d   : > { %s2580_s27 = smov %s1941_s28  ;;  %s2581_s28 = smov %s1945_s29 }
 0x23e   : > { %s2582_s29 = smov %s2201_s19  ;;  %s2583_s30 = smov %s1953_s9 }
 0x23f   : > { %s2584_s9 = smov %s1957_s10  ;;  %s2585_s10 = smov %s2178_s25 }
 0x240   : > { %s2586_s11 = smov %s1969_s13  ;;  %s2587_s12 = smov %s1973_s14 }
 0x241   : > { %s2588_s13 = smov %s2578_s6  ;;  %31 = sbr.rel (!%p29_p1) target bundleno = 22 (0x16), region = 134 }
 0x242   : > { %s2589_s14 = smov %s2579_s26 }
 0x246   :  { %1109 = vsyncpa [#allocation3], 1 }
 0x247   :  { %1111 = vsyncpa [#allocation3 + $0x1], 1 }
 0x248   :  { %1112 = vsyncpa [#allocation6], 1 }
 0x249   :  { %1114 = vsyncpa [#allocation6 + $0x1], 1 }
 0x24a   :  { %1115 = vsyncpa [#allocation9], 1 }
 0x24b   :  { %1116 = vsyncpa [#allocation4], 1 }
 0x24c   :  { %1118 = vsyncpa [#allocation4 + $0x1], 1 }
 0x24d   :  { %1119 = vsyncpa [#allocation12], 1 }
 0x24e   :  { %1121 = vsyncpa [#allocation12 + $0x1], 1 }

</bundles_post_ra>
